<compile_context>
chip_gen: v5e
topology: v5e:2x2
jax: 0.10.0
libtpu: 0.0.40
codegen_flags: <defaults>
</compile_context>

<pallas_src>
import jax
import jax.numpy as jnp
from jax.experimental import pallas as pl
from jax.experimental.pallas import tpu as pltpu


def _pooler_kernel(x_ref, w_ref, b_ref, o_ref):
    # x_ref: (B, block_s, H) window at s=0 (constant block -> DMA'd once per core)
    # w_ref: (tn, H) rows of the untransposed nn.Linear weight (out_features, in_features)
    # b_ref: (1, tn)
    # o_ref: (B, tn)
    x = x_ref[:, 0, :]                          # (B, H) first-token activations
    w = w_ref[...]                              # (tn, H)
    acc = jax.lax.dot_general(                  # x @ w.T without materializing w.T
        x, w,
        dimension_numbers=(((1,), (1,)), ((), ())),
        preferred_element_type=jnp.float32)
    acc = acc + b_ref[...].astype(jnp.float32)
    o_ref[...] = jnp.tanh(acc).astype(o_ref.dtype)


def _pick_tn(H, itemsize):
    """Output-feature tile: multiple of 128 dividing H, single weight tile <= 4 MiB
    (x2 for double buffering -> safe under v7x's 32 MiB scoped VMEM default)."""
    if H % 128 != 0:
        return H                                # small / odd H: one full block
    budget = 4 << 20
    for cand in (1024, 512, 384, 256, 128):
        if H % cand == 0 and cand * H * itemsize <= budget:
            return cand
    return 128


def roberta_pooler(hidden_states, weight, bias, *, tn=None):
    """hidden_states: (B, S, H); weight: (H, H) as nn.Linear stores it
    (out_features, in_features); bias: (H,)."""
    B, S, H = hidden_states.shape
    if tn is None:
        tn = _pick_tn(H, hidden_states.dtype.itemsize)
    assert H % tn == 0, "output-feature tile must divide hidden_size"
    block_s = min(S, 8)                         # sublane-friendly first-token window
    b2d = bias.reshape(1, H)                    # metadata-only reshape

    return pl.pallas_call(
        _pooler_kernel,
        out_shape=jax.ShapeDtypeStruct((B, H), hidden_states.dtype),
        grid=(H // tn,),
        in_specs=[
            # first-token window; constant index map => fetched once, reused across tiles
            pl.BlockSpec((B, block_s, H), lambda j: (0, 0, 0)),
            # rows [j*tn : (j+1)*tn) of the un-transposed weight
            pl.BlockSpec((tn, H), lambda j: (j, 0)),
            pl.BlockSpec((1, tn), lambda j: (0, j)),
        ],
        out_specs=pl.BlockSpec((B, tn), lambda j: (0, j)),
        compiler_params=pltpu.CompilerParams(
            dimension_semantics=("parallel",)),  # megacore: N tiles split across TCs
    )(hidden_states, weight, b2d)


def reference_pooler(hidden_states, weight, bias):
    first = hidden_states[:, 0]
    return jnp.tanh(first @ weight.T + bias)


if __name__ == "__main__":
    B, S, H = 2, 8, 256
    key = jax.random.PRNGKey(0)
    k1, k2, k3 = jax.random.split(key, 3)

    hidden_states = jax.random.normal(k1, (B, S, H), dtype=jnp.float32)
    # Mimic nn.Linear default init uniform(-1/sqrt(H), 1/sqrt(H)); weight is (out, in).
    bound = 1.0 / (H ** 0.5)
    weight = jax.random.uniform(k2, (H, H), minval=-bound, maxval=bound,
                                dtype=jnp.float32)
    bias = jax.random.uniform(k3, (H,), minval=-bound, maxval=bound,
                              dtype=jnp.float32)

    ref = reference_pooler(hidden_states, weight, bias)

    # Tiled path: tn=128 -> grid of 2 output-feature tiles.
    out = jax.block_until_ready(roberta_pooler(hidden_states, weight, bias, tn=128))
    assert out.shape == (B, H)
    assert jnp.allclose(out, ref, atol=2e-5, rtol=1e-5)

    # Auto-picked tile size (single block at this small H).
    out2 = jax.block_until_ready(roberta_pooler(hidden_states, weight, bias))
    assert jnp.allclose(out2, ref, atol=2e-5, rtol=1e-5)

    print("KERNEL_OK")
</pallas_src>

<mosaic_0001>
module attributes {stable_mosaic.version = 11 : i64} {
  func.func @_pooler_kernel(%arg0: i32, %arg1: memref<2x8x256xf32, #tpu.memory_space<vmem>>, %arg2: memref<128x256xf32, #tpu.memory_space<vmem>>, %arg3: memref<1x128xf32, #tpu.memory_space<vmem>>, %arg4: memref<2x128xf32, #tpu.memory_space<vmem>>) attributes {dimension_semantics = [#tpu.dimension_semantics<parallel>], iteration_bounds = array<i64: 2>, scalar_prefetch = 0 : i64, scratch_operands = 0 : i64, tpu.core_type = #tpu.core_type<tc>, window_params = [{pipeline_mode = #tpu.pipeline_mode<synchronous>, transform_indices = @transform_0, window_bounds = array<i64: 2, 8, 256>}, {transform_indices = @transform_1, window_bounds = array<i64: 128, 256>}, {transform_indices = @transform_2, window_bounds = array<i64: 1, 128>}, {transform_indices = @transform_3, window_bounds = array<i64: 2, 128>}]} {
    %c0 = arith.constant 0 : index
    %c0_0 = arith.constant 0 : index
    %c0_1 = arith.constant 0 : index
    %0 = vector.load %arg1[%c0, %c0_0, %c0_1] : memref<2x8x256xf32, #tpu.memory_space<vmem>>, vector<2x1x256xf32>
    %1 = vector.shape_cast %0 : vector<2x1x256xf32> to vector<2x256xf32>
    %c0_2 = arith.constant 0 : index
    %c0_3 = arith.constant 0 : index
    %2 = vector.load %arg2[%c0_2, %c0_3] : memref<128x256xf32, #tpu.memory_space<vmem>>, vector<128x256xf32>
    %cst = arith.constant dense<0.000000e+00> : vector<2x128xf32>
    %3 = tpu.matmul %1, %2, %cst {dimension_numbers = #tpu.dot_dimension_numbers<[1], [1], [0], [0], [0, 0, 1, 0], [], []>} : vector<2x256xf32>, vector<128x256xf32>, vector<2x128xf32> -> vector<2x128xf32>
    %c0_4 = arith.constant 0 : index
    %c0_5 = arith.constant 0 : index
    %4 = vector.load %arg3[%c0_4, %c0_5] : memref<1x128xf32, #tpu.memory_space<vmem>>, vector<1x128xf32>
    %5 = vector.broadcast %4 : vector<1x128xf32> to vector<2x128xf32>
    %6 = arith.addf %3, %5 : vector<2x128xf32>
    %7 = math.tanh %6 : vector<2x128xf32>
    %c0_6 = arith.constant 0 : index
    %c0_7 = arith.constant 0 : index
    %8 = vector.load %arg4[%c0_6, %c0_7] : memref<2x128xf32, #tpu.memory_space<vmem>>, vector<2x128xf32>
    tpu.vector_store %arg4[%c0_6, %c0_7], %7 {strides = array<i32>} : memref<2x128xf32, #tpu.memory_space<vmem>>, vector<2x128xf32>,
    return
  }
  func.func @transform_0(%arg0: i32) -> (i32, i32, i32) {
    %c0_i32 = arith.constant 0 : i32
    %c0_i32_0 = arith.constant 0 : i32
    %c0_i32_1 = arith.constant 0 : i32
    %c0_i32_2 = arith.constant 0 : i32
    return %c0_i32, %c0_i32_0, %c0_i32_1 : i32, i32, i32
  }
  func.func @transform_1(%arg0: i32) -> (i32, i32) {
    %c0_i32 = arith.constant 0 : i32
    %c0_i32_0 = arith.constant 0 : i32
    return %arg0, %c0_i32 : i32, i32
  }
  func.func @transform_2(%arg0: i32) -> (i32, i32) {
    %c0_i32 = arith.constant 0 : i32
    %c0_i32_0 = arith.constant 0 : i32
    return %c0_i32, %arg0 : i32, i32
  }
  func.func @transform_3(%arg0: i32) -> (i32, i32) {
    %c0_i32 = arith.constant 0 : i32
    %c0_i32_0 = arith.constant 0 : i32
    return %c0_i32, %arg0 : i32, i32
  }
}

</mosaic_0001>

<bundles_post_ra>
// kernel: tpu_custom_call.1
= control target key start
LH: loop header
LB: loop body
LE: loop exit
PB: predicated region body
PF: predicated region fallthrough
CT: control target
= control target key end

     0   :  { %8 = vsyncpa [#allocation3], 0  ;;  %s929_s0 = inlined_call_operand.hbm [shape: f32[2,8,256], index: 0, kind: input, shape index: {}]   ;;  %s930_s1 = inlined_call_operand.hbm [shape: f32[256,256], index: 1, kind: input, shape index: {}]   ;;  %s931_s2 = inlined_call_operand.hbm [shape: f32[1,256], index: 2, kind: input, shape index: {}]   ;;  %s932_s3 = inlined_call_operand.hbm [shape: f32[2,256], index: 3, kind: output, shape index: {}]  }
   0x1   :  { %9 = vsyncpa [#allocation6], 0 }
   0x2   :  { %11 = vsyncpa [#allocation6 + $0x1], 0 }
   0x3   :  { %12 = vsyncpa [#allocation4], 0 }
   0x4   :  { %14 = vsyncpa [#allocation4 + $0x1], 0  ;;  %s716_s12 = smov 0   ;;  %s718_s13 = smov 0  }
   0x5   :  { %s720_s14 = smov 0   ;;  %s722_s15 = smov 0  }
   0x6 LB: > { %s737_s16 = sadd.s32 1, %s691_s15   ;;  %s48_s17 = sadd.s32 1, %s687_s14  ;;  %s691_s15 = sphi %s722_s15, %s946_s15   ;;  %s687_s14 = sphi %s720_s14, %s945_s14   ;;  %s683_s13 = sphi %s718_s13, %s944_s13   ;;  %s679_s12 = sphi %s716_s12, %s943_s12  }
   0x7   : > { %s45_s18 = ssub.s32 %s691_s15, %s737_s16  ;;  %p55_p0 = scmp.ne.s32.totalorder %s687_s14, %s683_s13 }
   0x8   : > { %p46_p1 = scmp.eq.s32.totalorder %s45_s18, 0  ;;  %p56_p2 = scmp.eq.s32.totalorder %s691_s15, 0 }
   0x9   : > { %p490_p5 = scmp.lt.s32.totalorder %s691_s15, 2  ;;  %s151_s21 = sand.u32 1, %s691_s15  }
   0xa   : > { %s746_s19 = scalar_select %p46_p1, %s687_s14, %s48_s17  }
   0xb   : > { %p751_p3 = por %p56_p2, %p55_p0  ;;  %s153_s22 = sand.u32 1, %s687_s14  }
   0xc   : > { %s450_s23 = sshll.u32 %s153_s22, 8  ;;  %s463_s24 = sshll.u32 %s691_s15, 8 }
   0xd   : > { %s161_s27 = scalar_lea.hbm %s930_s1, %s463_s24  ;;  %s155_s29 = scalar_lea.vmem [#allocation5], %s450_s23 }
   0xe   : > { %s162_s28 = sshll.u32 %s161_s27, 4  ;;  %s164_s30 = sshll.u32 %s155_s29, 4  ;;  %s163_s28 = int_to_ptr.hbm [resolvable:$true] %s162_s28  ;;  %s165_s30 = int_to_ptr.vmem [resolvable:$true] %s164_s30 }
   0xf   : > { %p767_p6 = pnand %p490_p5, %p751_p3  ;;  %s772_s5 = sadd.s32 4294967295, %s691_s15  }
  0x10   : > { %s446_s6 = sadd.s32 4294967294, %s691_s15   ;;  %s775_s7 = scalar_lea.sflag [#allocation6], %s151_s21 }
  0x11   : > { %s531_s8 = sshra.s32 %s163_s28, 4  ;;  %p535_p8 = pneg %p767_p6  ;;  %s532_s8 = int_to_ptr.hbm [resolvable:$true] %s531_s8 }
  0x12   : > { %s533_s9 = scalar_lea.hbm %s532_s8, 256  ;;  %s538_s17 = scalar_lea.hbm %s930_s1, 512 }
  0x13   : > { %p534_p7 = scmp.ne.s32.totalorder %s532_s8, %s533_s9  ;;  %p539_p11 = scmp.lt.s32.totalorder %s532_s8, %s930_s1 }
  0x14   : > { %p540_p12 = scmp.lt.s32.totalorder %s538_s17, %s533_s9 }
  0x15   : > { %p536_p9 = pnand %p535_p8, %p534_p7 }
  0x16   : > { %p541_p13 = por %p540_p12, %p539_p11 }
  0x17   : > { %p537_p10 = pneg %p536_p9 }
  0x19   : > { %p542_p1 = pnand %p541_p13, %p537_p10 }
  0x1b   : > { %545 = shalt.err (!%p542_p1)
}
  0x1c   : > { %s693_s21 = smov 256   ;;  %s694_s23 = smov 16  }
  0x1d   : > { %481 = dma.hbm_to_vmem [thread:$0]  (!%p767_p6), %s163_s28, 4096, %s165_s30, %s775_s7, %s693_s21, %s693_s21, %s694_s23  }
  0x1e   : > { %p61_p2 = scmp.ne.s32.totalorder %s683_s13, %s679_s12  ;;  %p933_p3 = scmp.eq.s32.totalorder %s772_s5, 0 }
  0x1f   : > { %p111_p5 = scmp.eq.s32.totalorder %s772_s5, 1  ;;  %p117_p7 = scmp.eq.s32.totalorder %s446_s6, 1 }
  0x20   : > { %p797_p9 = por %p933_p3, %p61_p2  ;;  %p447_p10 = scmp.ge.s32.totalorder %s691_s15, 1 }
  0x21   : > { %p805_p11 = por %p111_p5, %p55_p0  ;;  %p809_p12 = por %p117_p7, %p61_p2 }
  0x22   : > { %p124_p13 = scmp.lt.s32.totalorder %s691_s15, 3  ;;  %s135_s29 = sshll.u32 %s929_s0, 4  ;;  %s136_s29 = int_to_ptr.hbm [resolvable:$true] %s135_s29 }
  0x23   : > { %s695_s6 = smov [#allocation2]   ;;  %s180_s11 = scalar_lea.hbm %s931_s2, %s691_s15 }
  0x24   : > { %p817_p1 = pnand %p447_p10, %p124_p13  ;;  %s137_s8 = sshll.u32 %s695_s6, 4  ;;  %s138_s8 = int_to_ptr.vmem [resolvable:$true] %s137_s8 }
  0x25   : > { %s177_s17 = scalar_lea.vmem [#allocation7], %s153_s22  ;;  %s182_s20 = sshll.u32 %s180_s11, 4  ;;  %s183_s20 = int_to_ptr.hbm [resolvable:$true] %s182_s20 }
  0x26   : > { %p474_p0 = pneg %p817_p1  ;;  %s184_s18 = sshll.u32 %s177_s17, 4  ;;  %s185_s18 = int_to_ptr.vmem [resolvable:$true] %s184_s18 }
  0x27   : > { %s591_s27 = sshra.s32 %s183_s20, 4  ;;  %s598_s10 = scalar_lea.hbm %s931_s2, 2  ;;  %s592_s27 = int_to_ptr.hbm [resolvable:$true] %s591_s27 }
  0x28   : > { %p475_p2 = pnand %p474_p0, %p933_p3  ;;  %s593_s28 = scalar_lea.hbm %s592_s27, 1 }
  0x29   : > { %p594_p5 = scmp.ne.s32.totalorder %s592_s27, %s593_s28  ;;  %p599_p13 = scmp.lt.s32.totalorder %s592_s27, %s931_s2 }
  0x2a   : > { %477 = dma.hbm_to_vmem [thread:$0]  (!%p475_p2), %s136_s29, 512, %s138_s8, [#allocation3], %s693_s21, %s693_s21, %s694_s23  }
  0x2b   : > { %p596_p7 = pnand %p594_p5, %p535_p8  ;;  %p600_p0 = scmp.lt.s32.totalorder %s598_s10, %s593_s28 }
  0x2d   : > { %p597_p10 = pneg %p596_p7  ;;  %p601_p4 = por %p600_p0, %p599_p13 }
  0x2f   : > { %p602_p3 = pnand %p601_p4, %p597_p10 }
  0x31   : > { %605 = shalt.err (!%p602_p3)
}
  0x32   : > { %484 = dma.hbm_to_vmem [thread:$0]  (!%p767_p6), %s183_s20, 16, %s185_s18, %s775_s7  }
  0x33   : > { %193 = sbr.rel (%p817_p1) target bundleno = 265 (0x109), region = 32  ;;  %p940_p8 = scmp.eq.s32.totalorder (!%p817_p1), %s772_s5, 0 }
  0x38   : > { %666 = dma.done.wait (%p940_p8), [#allocation3], 512   ;;  %p941_p2 = pmov %p940_p8 }
  0x39   : > { %s200_s21 = sand.u32 1, %s772_s5   ;;  %s851_s23 = sand.u32 1, %s683_s13  }
  0x3a   : > { %668 = vsyncadd (%p941_p2), [#allocation3], 4294966784  ;;  %s456_s29 = sshll.u32 %s851_s23, 8  ;;  %s201_s4 = scalar_lea.sflag [#allocation6], %s200_s21 }
  0x3b   : > { %s854_s8 = scalar_lea.vmem [#allocation5], %s456_s29 }
  0x3c   : > { %670 = dma.done.wait (%p797_p9), %s201_s4, 4112  }
  0x3d   : > { %672 = vsyncadd (%p797_p9), %s201_s4, 4294963184  ;;  %v275_v0 = vld [vmem:[%s854_s8 + $0xf0] sm:$0xff]  ;;  %v276_v1 = vld [vmem:[%s854_s8 + $0xf8] sm:$0xff]  ;;  %s213_s7 = scalar_lea.vmem [#allocation7], %s851_s23  ;;  %s457_s24 = sshll.u32 %s851_s23, 1 }
  0x3e   : > { %290 = vmatpush.xpose.msra.mxu0 %v275_v0  ;;  %310 = vmatpush.xpose.msra.mxu1 %v276_v1  ;;  %v273_v2 = vld [vmem:[%s854_s8 + $0xe0] sm:$0xff]  ;;  %v274_v3 = vld [vmem:[%s854_s8 + $0xe8] sm:$0xff]  ;;  %v271_v4 = vld [vmem:[%s854_s8 + $0xd0] sm:$0xff]  ;;  %s459_s30 = sshll.u32 %s772_s5, 1  ;;  %s240_s27 = scalar_lea.vmem [#allocation8], %s457_s24 }
  0x3f   : > { %v272_v5 = vld [vmem:[%s854_s8 + $0xd8] sm:$0xff]  ;;  %v269_v6 = vld [vmem:[%s854_s8 + $0xc0] sm:$0xff]  ;;  %v270_v7 = vld [vmem:[%s854_s8 + $0xc8] sm:$0xff]  ;;  %s343_s20 = scalar_lea.hbm %s932_s3, %s459_s30  ;;  %s345_s28 = sshll.u32 %s240_s27, 4  ;;  %s346_s28 = int_to_ptr.vmem [resolvable:$true] %s345_s28 }
  0x40   : > { %v267_v8 = vld [vmem:[%s854_s8 + $0xb0] sm:$0xff]  ;;  %v268_v9 = vld [vmem:[%s854_s8 + $0xb8] sm:$0xff]  ;;  %v265_v10 = vld [vmem:[%s854_s8 + $0xa0] sm:$0xff]  ;;  %s347_s6 = sshll.u32 %s343_s20, 4  ;;  %s333_s9 = scalar_lea.sflag [#allocation4], %s851_s23  ;;  %s348_s6 = int_to_ptr.hbm [resolvable:$true] %s347_s6 }
  0x41   : > { %v266_v11 = vld [vmem:[%s854_s8 + $0xa8] sm:$0xff]  ;;  %v263_v12 = vld [vmem:[%s854_s8 + $0x90] sm:$0xff]  ;;  %v264_v13 = vld [vmem:[%s854_s8 + $0x98] sm:$0xff]  ;;  %s635_s10 = sshra.s32 %s348_s6, 4  ;;  %s641_s21 = scalar_lea.hbm %s932_s3, 4  ;;  %s636_s10 = int_to_ptr.hbm [resolvable:$true] %s635_s10 }
  0x42   : > { %291 = vmatpush.xpose.msra.mxu0 %v273_v2  ;;  %311 = vmatpush.xpose.msra.mxu1 %v274_v3  ;;  %v242_v14 = vld [vmem:[#allocation2] ss:$8 sm:$0x3]  ;;  %v244_v15 = vld [vmem:[#allocation2 + $0x10] ss:$8 sm:$0x3]  ;;  %p642_p9 = scmp.lt.s32.totalorder %s636_s10, %s932_s3 }
  0x43   : > { %283 = vst [vmem:[#allocation1] ss:$9 sm:$0xff] %v242_v14  ;;  %v261_v16 = vld [vmem:[%s854_s8 + $0x80] sm:$0xff]  ;;  %v262_v17 = vld [vmem:[%s854_s8 + $0x88] sm:$0xff]  ;;  %v259_v18 = vld [vmem:[%s854_s8 + $0x70] sm:$0xff]  ;;  %s637_s22 = scalar_lea.hbm %s636_s10, 2 }
  0x44   : > { %285 = vst [vmem:[#allocation1 + $0x1] ss:$9 sm:$0xff] %v244_v15  ;;  %v260_v19 = vld [vmem:[%s854_s8 + $0x78] sm:$0xff]  ;;  %v257_v20 = vld [vmem:[%s854_s8 + $0x60] sm:$0xff]  ;;  %v258_v21 = vld [vmem:[%s854_s8 + $0x68] sm:$0xff]  ;;  %p638_p4 = scmp.ne.s32.totalorder %s636_s10, %s637_s22  ;;  %p643_p1 = scmp.lt.s32.totalorder %s641_s21, %s637_s22 }
  0x45   : > { %v255_v22 = vld [vmem:[%s854_s8 + $0x50] sm:$0xff]  ;;  %v256_v23 = vld [vmem:[%s854_s8 + $0x58] sm:$0xff]  ;;  %v253_v24 = vld [vmem:[%s854_s8 + $0x40] sm:$0xff] }
  0x46   : > { %292 = vmatpush.xpose.msra.mxu0 %v271_v4  ;;  %312 = vmatpush.xpose.msra.mxu1 %v272_v5  ;;  %v254_v25 = vld [vmem:[%s854_s8 + $0x48] sm:$0xff]  ;;  %v251_v26 = vld [vmem:[%s854_s8 + $0x30] sm:$0xff]  ;;  %v252_v27 = vld [vmem:[%s854_s8 + $0x38] sm:$0xff]  ;;  %p639_p6 = pnand %p638_p4, %p805_p11  ;;  %p644_p5 = por %p643_p1, %p642_p9 }
  0x47   : > { %v249_v28 = vld [vmem:[%s854_s8 + $0x20] sm:$0xff]  ;;  %v250_v29 = vld [vmem:[%s854_s8 + $0x28] sm:$0xff]  ;;  %v247_v30 = vld [vmem:[%s854_s8 + $0x10] sm:$0xff] }
  0x48   : > { %v248_v31 = vld [vmem:[%s854_s8 + $0x18] sm:$0xff]  ;;  %v245_v32 = vld [vmem:[%s854_s8] sm:$0xff]  ;;  %v246_v33 = vld [vmem:[%s854_s8 + $0x8] sm:$0xff]  ;;  %p640_p3 = pneg %p639_p6 }
  0x49   : > { %v528_v36 = vld [vmem:[%s213_s7] ss:$0 sm:$0xff] }
  0x4a   : > { %293 = vmatpush.xpose.msra.mxu0 %v269_v6  ;;  %313 = vmatpush.xpose.msra.mxu1 %v270_v7  ;;  %p645_p7 = pnand %p644_p5, %p640_p3 }
  0x4b   : > { %v286_v34 = vld [vmem:[#allocation1] sm:$0xff]  ;;  %v287_v35 = vld [vmem:[#allocation1 + $0x9] sm:$0xff] }
  0x4e   : > { %294 = vmatpush.xpose.msra.mxu0 %v267_v8  ;;  %314 = vmatpush.xpose.msra.mxu1 %v268_v9 }
  0x52   : > { %295 = vmatpush.xpose.msra.mxu0 %v265_v10  ;;  %315 = vmatpush.xpose.msra.mxu1 %v266_v11 }
  0x56   : > { %296 = vmatpush.xpose.msra.mxu0 %v263_v12  ;;  %316 = vmatpush.xpose.msra.mxu1 %v264_v13 }
  0x5a   : > { %297 = vmatpush.xpose.msra.mxu0 %v261_v16  ;;  %317 = vmatpush.xpose.msra.mxu1 %v262_v17 }
  0x5e   : > { %298 = vmatpush.xpose.msra.mxu0 %v259_v18  ;;  %318 = vmatpush.xpose.msra.mxu1 %v260_v19 }
  0x62   : > { %299 = vmatpush.xpose.msra.mxu0 %v257_v20  ;;  %319 = vmatpush.xpose.msra.mxu1 %v258_v21 }
  0x66   : > { %300 = vmatpush.xpose.msra.mxu0 %v255_v22  ;;  %320 = vmatpush.xpose.msra.mxu1 %v256_v23 }
  0x6a   : > { %301 = vmatpush.xpose.msra.mxu0 %v253_v24  ;;  %321 = vmatpush.xpose.msra.mxu1 %v254_v25 }
  0x6e   : > { %302 = vmatpush.xpose.msra.mxu0 %v251_v26  ;;  %322 = vmatpush.xpose.msra.mxu1 %v252_v27 }
  0x72   : > { %303 = vmatpush.xpose.msra.mxu0 %v249_v28  ;;  %323 = vmatpush.xpose.msra.mxu1 %v250_v29 }
  0x76   : > { %304 = vmatpush.xpose.msra.mxu0 %v247_v30  ;;  %324 = vmatpush.xpose.msra.mxu1 %v248_v31 }
  0x7a   : > { %305 = vmatpush.xpose.msra.mxu0 %v245_v32  ;;  %325 = vmatpush.xpose.msra.mxu1 %v246_v33 }
  0x7d   : > { %306 = vmatmul.f32.vlgmr.msra.gmra.mxu0 %v286_v34  ;;  %326 = vmatmul.f32.vlgmr.msra.gmra.mxu1 %v287_v35 }
  0xfa   : > { %v307_v37 = vpop.f32.mrf.mxu0  ;;  %v327_v38 = vpop.f32.mrf.mxu1 }
  0xfb   : > { %v308_v39 = vadd.f32 %v528_v36, %v307_v37 }
  0xfd   : > { %v328_v40 = vadd.f32 %v327_v38, %v308_v39 }
  0xff   : > { %529 = vtanh.f32 %v328_v40 }
 0x105   : > { %v530_v41 = vpop.eup %529 }
 0x106   : > { %331 = vst [vmem:[%s240_s27] sm:$0x3] %v530_v41 }
 0x107   : > { %648 = shalt.err (!%p645_p7)
}
 0x108   : > { %472 = dma.vmem_to_hbm [thread:$0]  (%p805_p11), %s346_s28, 32, %s348_s6, %s333_s9  }
 0x109 PF: > { %s359_s23 = sand.u32 1, %s679_s12   ;;  %p942_p10 = scmp.ge.s32.totalorder %s691_s15, 2 }
 0x10a   : > { %s360_s8 = scalar_lea.sflag [#allocation4], %s359_s23 }
 0x10b   : > { %p486_p13 = pnand %p942_p10, %p809_p12 }
 0x10d   : > { %p487_p0 = pneg %p486_p13 }
 0x10f   : > { %674 = dma.done.wait (%p487_p0), %s360_s8, 32  }
 0x110   : > { %676 = vsyncadd (%p487_p0), %s360_s8, 4294967264  ;;  %p17_p8 = scmp.ge.s32.totalorder %s737_s16, 4   ;;  %s943_s12 = smov %s683_s13 }
 0x111   : > { %s944_s13 = smov %s687_s14  ;;  %s945_s14 = smov %s746_s19 }
 0x112   : > { %s946_s15 = smov %s737_s16  ;;  %19 = sbr.rel (!%p17_p8) target bundleno = 6 (0x6), region = 95 }
 0x117   :  { %366 = vsyncpa [#allocation3], 1 }
 0x118   :  { %368 = vsyncpa [#allocation3 + $0x1], 1 }
 0x119   :  { %369 = vsyncpa [#allocation6], 1 }
 0x11a   :  { %371 = vsyncpa [#allocation6 + $0x1], 1 }
 0x11b   :  { %372 = vsyncpa [#allocation4], 1 }
 0x11c   :  { %374 = vsyncpa [#allocation4 + $0x1], 1 }

</bundles_post_ra>
